<compile_context>
chip_gen: v7x
topology: tpu7x:2x2x1
jax: 0.10.0
libtpu: 0.0.40
codegen_flags: <defaults>
</compile_context>

<pallas_src>
import jax
import jax.numpy as jnp
from jax import lax
from jax.experimental import pallas as pl
from jax.experimental.pallas import tpu as pltpu


def _rnn_seq_kernel(x_ref, h0_ref, wx_ref, wh_ref, b_ref, out_ref, h_ref):
    """One grid step == `tt` RNN time steps. h_ref (resident output) carries state."""
    g = pl.program_id(0)
    tt = x_ref.shape[0]            # time-steps per block
    H = h_ref.shape[1]

    # Initialize the carried hidden state from h0 on the first block.
    @pl.when(g == 0)
    def _():
        h_ref[...] = h0_ref[...]

    # Hoist resident operands out of the time loop (loaded once per block).
    wx = wx_ref[...]               # (I, H+O)
    wh = wh_ref[...]               # (H, H+O)
    b = b_ref[...]                 # (1, H+O)

    def step(i, h):
        x = x_ref[i]               # (B, I)
        # Fused projection: [x, h] @ [W_i2h^T | W_i2o^T] + [b_i2h | b_i2o]
        z = (
            jnp.dot(x, wx, preferred_element_type=jnp.float32)
            + jnp.dot(h, wh, preferred_element_type=jnp.float32)
            + b
        )                          # (B, H + O)

        new_h = z[:, :H]           # (B, H)
        logits = z[:, H:]          # (B, O)

        # Numerically-stable log-softmax along dim=1 (f32 throughout).
        m = jnp.max(logits, axis=1, keepdims=True)
        shifted = logits - m
        lse = jnp.log(jnp.sum(jnp.exp(shifted), axis=1, keepdims=True))

        out_ref[i] = shifted - lse  # row write into the resident output block
        return new_h

    # Short fixed trip-count -> unrolled for LLO scheduler visibility.
    h_final = lax.fori_loop(0, tt, step, h_ref[...], unroll=True)
    h_ref[...] = h_final            # carry hidden to the next grid step


def prepare_params(params):
    """One-time re-layout of PyTorch (out,in) weights into fused (in,out) form."""
    w_i2h = params["w_i2h"]        # (H, I+H)
    w_i2o = params["w_i2o"]        # (O, I+H)
    H = w_i2h.shape[0]
    O = w_i2o.shape[0]
    I = w_i2h.shape[1] - H
    w_cat = jnp.concatenate([w_i2h, w_i2o], axis=0).T       # (I+H, H+O)
    return {
        "w_x": w_cat[:I],                                    # (I, H+O)
        "w_h": w_cat[I:],                                    # (H, H+O)
        "b": jnp.concatenate([params["b_i2h"], params["b_i2o"]]).reshape(1, H + O),
        "input_size": I,
        "hidden_size": H,
        "output_size": O,
    }


def rnn_sequence_forward(xs, h0, prepped, *, steps_per_block=None):
    """Run T RNN steps in a single pallas_call.

    xs: (T, B, input_size) f32, h0: (B, hidden_size) f32.
    Returns (outputs (T, B, output_size), final_hidden (B, hidden_size)).
    """
    T, B, I = xs.shape
    H = prepped["hidden_size"]
    O = prepped["output_size"]
    w_x, w_h, b = prepped["w_x"], prepped["w_h"], prepped["b"]

    # Time steps handled per grid iteration (unrolled in-kernel). Keep the
    # unroll modest; amortizes grid overhead and batches input/output DMA.
    tt = min(T, 16) if steps_per_block is None else steps_per_block
    while T % tt:
        tt -= 1

    out, h_final = pl.pallas_call(
        _rnn_seq_kernel,
        out_shape=(
            jax.ShapeDtypeStruct((T, B, O), jnp.float32),
            jax.ShapeDtypeStruct((B, H), jnp.float32),
        ),
        grid=(T // tt,),
        in_specs=[
            pl.BlockSpec((tt, B, I), lambda g: (g, 0, 0)),         # input tile, tt steps
            pl.BlockSpec((B, H), lambda g: (0, 0)),                # h0 (resident)
            pl.BlockSpec((I, H + O), lambda g: (0, 0)),            # fused W_x (resident)
            pl.BlockSpec((H, H + O), lambda g: (0, 0)),            # fused W_h (resident)
            pl.BlockSpec((1, H + O), lambda g: (0, 0)),            # fused bias (resident)
        ],
        out_specs=(
            pl.BlockSpec((tt, B, O), lambda g: (g, 0, 0)),         # flushed every tt steps
            pl.BlockSpec((B, H), lambda g: (0, 0)),                # hidden carry (resident)
        ),
        compiler_params=pltpu.CompilerParams(
            dimension_semantics=("arbitrary",),                    # sequential recurrence
        ),
    )(xs, h0, w_x, w_h, b)
    return out, h_final


def rnn_forward(input_t, hidden_t, prepped):
    """Exact semantics of the PyTorch module's forward: one cell step."""
    out_seq, new_h = rnn_sequence_forward(input_t[None], hidden_t, prepped)
    return out_seq[0], new_h


def init_params(key, input_size, hidden_size, output_size):
    """Deterministic init mimicking nn.Linear's U(-1/sqrt(fan_in), 1/sqrt(fan_in))."""
    fan_in = input_size + hidden_size
    bound = 1.0 / jnp.sqrt(fan_in)
    k1, k2, k3, k4 = jax.random.split(key, 4)
    return {
        "w_i2h": jax.random.uniform(k1, (hidden_size, fan_in), jnp.float32, -bound, bound),
        "b_i2h": jax.random.uniform(k2, (hidden_size,), jnp.float32, -bound, bound),
        "w_i2o": jax.random.uniform(k3, (output_size, fan_in), jnp.float32, -bound, bound),
        "b_i2o": jax.random.uniform(k4, (output_size,), jnp.float32, -bound, bound),
    }


if __name__ == "__main__":
    key = jax.random.PRNGKey(0)
    B, T = 2, 8
    input_size, hidden_size, output_size = 16, 32, 8

    kp, kx, _ = jax.random.split(key, 3)
    params = init_params(kp, input_size, hidden_size, output_size)
    prepped = prepare_params(params)                 # one-time weight re-layout

    xs = jax.random.normal(kx, (T, B, input_size), jnp.float32)
    h0 = jnp.zeros((B, hidden_size), jnp.float32)    # init_hidden, broadcast to batch

    # Fused full-sequence call: one pallas_call for all T steps.
    out_seq, h_final = rnn_sequence_forward(xs, h0, prepped)
    jax.block_until_ready((out_seq, h_final))

    # Single-step call (module's forward signature).
    out_step, h_step = rnn_forward(xs[0], h0, prepped)
    jax.block_until_ready((out_step, h_step))

    # Plain-JAX reference of the same math.
    def ref_cell(x, h):
        combined = jnp.concatenate([x, h], axis=1)
        hidden = combined @ params["w_i2h"].T + params["b_i2h"]
        logits = combined @ params["w_i2o"].T + params["b_i2o"]
        return jax.nn.log_softmax(logits, axis=1), hidden

    ref_outs, h = [], h0
    for t in range(T):
        o, h = ref_cell(xs[t], h)
        ref_outs.append(o)
    ref_out_seq = jnp.stack(ref_outs)

    assert jnp.allclose(out_seq, ref_out_seq, atol=1e-4), "sequence output mismatch"
    assert jnp.allclose(h_final, h, atol=1e-4), "final hidden mismatch"

    ref_o0, ref_h1 = ref_cell(xs[0], h0)
    assert jnp.allclose(out_step, ref_o0, atol=1e-4), "single-step output mismatch"
    assert jnp.allclose(h_step, ref_h1, atol=1e-4), "single-step hidden mismatch"

    print("KERNEL_OK")
</pallas_src>

<mosaic_0001>
module attributes {stable_mosaic.version = 11 : i64} {
  func.func @_rnn_seq_kernel(%arg0: i32, %arg1: memref<8x2x16xf32, #tpu.memory_space<vmem>>, %arg2: memref<2x32xf32, #tpu.memory_space<vmem>>, %arg3: memref<16x40xf32, #tpu.memory_space<vmem>>, %arg4: memref<32x40xf32, #tpu.memory_space<vmem>>, %arg5: memref<1x40xf32, #tpu.memory_space<vmem>>, %arg6: memref<8x2x8xf32, #tpu.memory_space<vmem>>, %arg7: memref<2x32xf32, #tpu.memory_space<vmem>>) attributes {dimension_semantics = [#tpu.dimension_semantics<arbitrary>], iteration_bounds = array<i64: 1>, scalar_prefetch = 0 : i64, scratch_operands = 0 : i64, tpu.core_type = #tpu.core_type<tc>, window_params = [{transform_indices = @transform_0, window_bounds = array<i64: 8, 2, 16>}, {pipeline_mode = #tpu.pipeline_mode<synchronous>, transform_indices = @transform_1, window_bounds = array<i64: 2, 32>}, {pipeline_mode = #tpu.pipeline_mode<synchronous>, transform_indices = @transform_2, window_bounds = array<i64: 16, 40>}, {pipeline_mode = #tpu.pipeline_mode<synchronous>, transform_indices = @transform_3, window_bounds = array<i64: 32, 40>}, {pipeline_mode = #tpu.pipeline_mode<synchronous>, transform_indices = @transform_4, window_bounds = array<i64: 1, 40>}, {transform_indices = @transform_5, window_bounds = array<i64: 8, 2, 8>}, {pipeline_mode = #tpu.pipeline_mode<synchronous>, transform_indices = @transform_6, window_bounds = array<i64: 2, 32>}]} {
    %c0_i32 = arith.constant 0 : i32
    %0 = arith.cmpi eq, %arg0, %c0_i32 : i32
    %1 = arith.extui %0 : i1 to i32
    %c0_i32_0 = arith.constant 0 : i32
    %2 = arith.cmpi ne, %1, %c0_i32_0 : i32
    scf.if %2 {
      %c0_74 = arith.constant 0 : index
      %c0_75 = arith.constant 0 : index
      %200 = vector.load %arg2[%c0_74, %c0_75] : memref<2x32xf32, #tpu.memory_space<vmem>>, vector<2x32xf32>
      %c0_76 = arith.constant 0 : index
      %c0_77 = arith.constant 0 : index
      %201 = vector.load %arg7[%c0_76, %c0_77] : memref<2x32xf32, #tpu.memory_space<vmem>>, vector<2x32xf32>
      tpu.vector_store %arg7[%c0_76, %c0_77], %200 {strides = array<i32>} : memref<2x32xf32, #tpu.memory_space<vmem>>, vector<2x32xf32>,
    } else {
    }
    %c0 = arith.constant 0 : index
    %c0_1 = arith.constant 0 : index
    %3 = vector.load %arg3[%c0, %c0_1] : memref<16x40xf32, #tpu.memory_space<vmem>>, vector<16x40xf32>
    %c0_2 = arith.constant 0 : index
    %c0_3 = arith.constant 0 : index
    %4 = vector.load %arg4[%c0_2, %c0_3] : memref<32x40xf32, #tpu.memory_space<vmem>>, vector<32x40xf32>
    %c0_4 = arith.constant 0 : index
    %c0_5 = arith.constant 0 : index
    %5 = vector.load %arg5[%c0_4, %c0_5] : memref<1x40xf32, #tpu.memory_space<vmem>>, vector<1x40xf32>
    %c0_6 = arith.constant 0 : index
    %c0_7 = arith.constant 0 : index
    %6 = vector.load %arg7[%c0_6, %c0_7] : memref<2x32xf32, #tpu.memory_space<vmem>>, vector<2x32xf32>
    %c0_i32_8 = arith.constant 0 : i32
    %7 = arith.index_cast %c0_i32_8 : i32 to index
    %c0_9 = arith.constant 0 : index
    %c0_10 = arith.constant 0 : index
    %8 = vector.load %arg1[%7, %c0_9, %c0_10] : memref<8x2x16xf32, #tpu.memory_space<vmem>>, vector<1x2x16xf32>
    %9 = vector.shape_cast %8 : vector<1x2x16xf32> to vector<2x16xf32>
    %cst = arith.constant dense<0.000000e+00> : vector<2x40xf32>
    %10 = tpu.matmul %9, %3, %cst {dimension_numbers = #tpu.dot_dimension_numbers<[1], [0], [0], [1], [0, 0, 1, 1], [], []>} : vector<2x16xf32>, vector<16x40xf32>, vector<2x40xf32> -> vector<2x40xf32>
    %cst_11 = arith.constant dense<0.000000e+00> : vector<2x40xf32>
    %11 = tpu.matmul %6, %4, %cst_11 {dimension_numbers = #tpu.dot_dimension_numbers<[1], [0], [0], [1], [0, 0, 1, 1], [], []>} : vector<2x32xf32>, vector<32x40xf32>, vector<2x40xf32> -> vector<2x40xf32>
    %12 = arith.addf %10, %11 : vector<2x40xf32>
    %13 = vector.broadcast %5 : vector<1x40xf32> to vector<2x40xf32>
    %14 = arith.addf %12, %13 : vector<2x40xf32>
    %15 = vector.extract_strided_slice %14 {offsets = [0, 0], sizes = [2, 32], strides = [1, 1]} : vector<2x40xf32> to vector<2x32xf32>
    %16 = vector.extract_strided_slice %14 {offsets = [0, 32], sizes = [2, 8], strides = [1, 1]} : vector<2x40xf32> to vector<2x8xf32>
    %cst_12 = arith.constant dense<0xFF800000> : vector<2xf32>
    %17 = vector.multi_reduction <maximumf>, %16, %cst_12 [1] : vector<2x8xf32> to vector<2xf32>
    %18 = vector.shape_cast %17 : vector<2xf32> to vector<2x1xf32>
    %19 = vector.broadcast %18 : vector<2x1xf32> to vector<2x8xf32>
    %20 = arith.subf %16, %19 : vector<2x8xf32>
    %21 = math.exp %20 : vector<2x8xf32>
    %cst_13 = arith.constant dense<0.000000e+00> : vector<2xf32>
    %22 = vector.multi_reduction <add>, %21, %cst_13 [1] : vector<2x8xf32> to vector<2xf32>
    %23 = vector.shape_cast %22 : vector<2xf32> to vector<2x1xf32>
    %24 = math.log %23 : vector<2x1xf32>
    %25 = vector.broadcast %24 : vector<2x1xf32> to vector<2x8xf32>
    %26 = arith.subf %20, %25 : vector<2x8xf32>
    %27 = arith.index_cast %c0_i32_8 : i32 to index
    %c0_14 = arith.constant 0 : index
    %c0_15 = arith.constant 0 : index
    %28 = vector.load %arg6[%27, %c0_14, %c0_15] : memref<8x2x8xf32, #tpu.memory_space<vmem>>, vector<1x2x8xf32>
    %29 = vector.shape_cast %28 : vector<1x2x8xf32> to vector<2x8xf32>
    %30 = vector.shape_cast %26 : vector<2x8xf32> to vector<1x2x8xf32>
    tpu.vector_store %arg6[%27, %c0_14, %c0_15], %30 {strides = array<i32>} : memref<8x2x8xf32, #tpu.memory_space<vmem>>, vector<1x2x8xf32>,
    %c1_i32 = arith.constant 1 : i32
    %31 = arith.index_cast %c1_i32 : i32 to index
    %c0_16 = arith.constant 0 : index
    %c0_17 = arith.constant 0 : index
    %32 = vector.load %arg1[%31, %c0_16, %c0_17] : memref<8x2x16xf32, #tpu.memory_space<vmem>>, vector<1x2x16xf32>
    %33 = vector.shape_cast %32 : vector<1x2x16xf32> to vector<2x16xf32>
    %cst_18 = arith.constant dense<0.000000e+00> : vector<2x40xf32>
    %34 = tpu.matmul %33, %3, %cst_18 {dimension_numbers = #tpu.dot_dimension_numbers<[1], [0], [0], [1], [0, 0, 1, 1], [], []>} : vector<2x16xf32>, vector<16x40xf32>, vector<2x40xf32> -> vector<2x40xf32>
    %cst_19 = arith.constant dense<0.000000e+00> : vector<2x40xf32>
    %35 = tpu.matmul %15, %4, %cst_19 {dimension_numbers = #tpu.dot_dimension_numbers<[1], [0], [0], [1], [0, 0, 1, 1], [], []>} : vector<2x32xf32>, vector<32x40xf32>, vector<2x40xf32> -> vector<2x40xf32>
    %36 = arith.addf %34, %35 : vector<2x40xf32>
    %37 = vector.broadcast %5 : vector<1x40xf32> to vector<2x40xf32>
    %38 = arith.addf %36, %37 : vector<2x40xf32>
    %39 = vector.extract_strided_slice %38 {offsets = [0, 0], sizes = [2, 32], strides = [1, 1]} : vector<2x40xf32> to vector<2x32xf32>
    %40 = vector.extract_strided_slice %38 {offsets = [0, 32], sizes = [2, 8], strides = [1, 1]} : vector<2x40xf32> to vector<2x8xf32>
    %cst_20 = arith.constant dense<0xFF800000> : vector<2xf32>
    %41 = vector.multi_reduction <maximumf>, %40, %cst_20 [1] : vector<2x8xf32> to vector<2xf32>
    %42 = vector.shape_cast %41 : vector<2xf32> to vector<2x1xf32>
    %43 = vector.broadcast %42 : vector<2x1xf32> to vector<2x8xf32>
    %44 = arith.subf %40, %43 : vector<2x8xf32>
    %45 = math.exp %44 : vector<2x8xf32>
    %cst_21 = arith.constant dense<0.000000e+00> : vector<2xf32>
    %46 = vector.multi_reduction <add>, %45, %cst_21 [1] : vector<2x8xf32> to vector<2xf32>
    %47 = vector.shape_cast %46 : vector<2xf32> to vector<2x1xf32>
    %48 = math.log %47 : vector<2x1xf32>
    %49 = vector.broadcast %48 : vector<2x1xf32> to vector<2x8xf32>
    %50 = arith.subf %44, %49 : vector<2x8xf32>
    %51 = arith.index_cast %c1_i32 : i32 to index
    %c0_22 = arith.constant 0 : index
    %c0_23 = arith.constant 0 : index
    %52 = vector.load %arg6[%51, %c0_22, %c0_23] : memref<8x2x8xf32, #tpu.memory_space<vmem>>, vector<1x2x8xf32>
    %53 = vector.shape_cast %52 : vector<1x2x8xf32> to vector<2x8xf32>
    %54 = vector.shape_cast %50 : vector<2x8xf32> to vector<1x2x8xf32>
    tpu.vector_store %arg6[%51, %c0_22, %c0_23], %54 {strides = array<i32>} : memref<8x2x8xf32, #tpu.memory_space<vmem>>, vector<1x2x8xf32>,
    %c2_i32 = arith.constant 2 : i32
    %55 = arith.index_cast %c2_i32 : i32 to index
    %c0_24 = arith.constant 0 : index
    %c0_25 = arith.constant 0 : index
    %56 = vector.load %arg1[%55, %c0_24, %c0_25] : memref<8x2x16xf32, #tpu.memory_space<vmem>>, vector<1x2x16xf32>
    %57 = vector.shape_cast %56 : vector<1x2x16xf32> to vector<2x16xf32>
    %cst_26 = arith.constant dense<0.000000e+00> : vector<2x40xf32>
    %58 = tpu.matmul %57, %3, %cst_26 {dimension_numbers = #tpu.dot_dimension_numbers<[1], [0], [0], [1], [0, 0, 1, 1], [], []>} : vector<2x16xf32>, vector<16x40xf32>, vector<2x40xf32> -> vector<2x40xf32>
    %cst_27 = arith.constant dense<0.000000e+00> : vector<2x40xf32>
    %59 = tpu.matmul %39, %4, %cst_27 {dimension_numbers = #tpu.dot_dimension_numbers<[1], [0], [0], [1], [0, 0, 1, 1], [], []>} : vector<2x32xf32>, vector<32x40xf32>, vector<2x40xf32> -> vector<2x40xf32>
    %60 = arith.addf %58, %59 : vector<2x40xf32>
    %61 = vector.broadcast %5 : vector<1x40xf32> to vector<2x40xf32>
    %62 = arith.addf %60, %61 : vector<2x40xf32>
    %63 = vector.extract_strided_slice %62 {offsets = [0, 0], sizes = [2, 32], strides = [1, 1]} : vector<2x40xf32> to vector<2x32xf32>
    %64 = vector.extract_strided_slice %62 {offsets = [0, 32], sizes = [2, 8], strides = [1, 1]} : vector<2x40xf32> to vector<2x8xf32>
    %cst_28 = arith.constant dense<0xFF800000> : vector<2xf32>
    %65 = vector.multi_reduction <maximumf>, %64, %cst_28 [1] : vector<2x8xf32> to vector<2xf32>
    %66 = vector.shape_cast %65 : vector<2xf32> to vector<2x1xf32>
    %67 = vector.broadcast %66 : vector<2x1xf32> to vector<2x8xf32>
    %68 = arith.subf %64, %67 : vector<2x8xf32>
    %69 = math.exp %68 : vector<2x8xf32>
    %cst_29 = arith.constant dense<0.000000e+00> : vector<2xf32>
    %70 = vector.multi_reduction <add>, %69, %cst_29 [1] : vector<2x8xf32> to vector<2xf32>
    %71 = vector.shape_cast %70 : vector<2xf32> to vector<2x1xf32>
    %72 = math.log %71 : vector<2x1xf32>
    %73 = vector.broadcast %72 : vector<2x1xf32> to vector<2x8xf32>
    %74 = arith.subf %68, %73 : vector<2x8xf32>
    %75 = arith.index_cast %c2_i32 : i32 to index
    %c0_30 = arith.constant 0 : index
    %c0_31 = arith.constant 0 : index
    %76 = vector.load %arg6[%75, %c0_30, %c0_31] : memref<8x2x8xf32, #tpu.memory_space<vmem>>, vector<1x2x8xf32>
    %77 = vector.shape_cast %76 : vector<1x2x8xf32> to vector<2x8xf32>
    %78 = vector.shape_cast %74 : vector<2x8xf32> to vector<1x2x8xf32>
    tpu.vector_store %arg6[%75, %c0_30, %c0_31], %78 {strides = array<i32>} : memref<8x2x8xf32, #tpu.memory_space<vmem>>, vector<1x2x8xf32>,
    %c3_i32 = arith.constant 3 : i32
    %79 = arith.index_cast %c3_i32 : i32 to index
    %c0_32 = arith.constant 0 : index
    %c0_33 = arith.constant 0 : index
    %80 = vector.load %arg1[%79, %c0_32, %c0_33] : memref<8x2x16xf32, #tpu.memory_space<vmem>>, vector<1x2x16xf32>
    %81 = vector.shape_cast %80 : vector<1x2x16xf32> to vector<2x16xf32>
    %cst_34 = arith.constant dense<0.000000e+00> : vector<2x40xf32>
    %82 = tpu.matmul %81, %3, %cst_34 {dimension_numbers = #tpu.dot_dimension_numbers<[1], [0], [0], [1], [0, 0, 1, 1], [], []>} : vector<2x16xf32>, vector<16x40xf32>, vector<2x40xf32> -> vector<2x40xf32>
    %cst_35 = arith.constant dense<0.000000e+00> : vector<2x40xf32>
    %83 = tpu.matmul %63, %4, %cst_35 {dimension_numbers = #tpu.dot_dimension_numbers<[1], [0], [0], [1], [0, 0, 1, 1], [], []>} : vector<2x32xf32>, vector<32x40xf32>, vector<2x40xf32> -> vector<2x40xf32>
    %84 = arith.addf %82, %83 : vector<2x40xf32>
    %85 = vector.broadcast %5 : vector<1x40xf32> to vector<2x40xf32>
    %86 = arith.addf %84, %85 : vector<2x40xf32>
    %87 = vector.extract_strided_slice %86 {offsets = [0, 0], sizes = [2, 32], strides = [1, 1]} : vector<2x40xf32> to vector<2x32xf32>
    %88 = vector.extract_strided_slice %86 {offsets = [0, 32], sizes = [2, 8], strides = [1, 1]} : vector<2x40xf32> to vector<2x8xf32>
    %cst_36 = arith.constant dense<0xFF800000> : vector<2xf32>
    %89 = vector.multi_reduction <maximumf>, %88, %cst_36 [1] : vector<2x8xf32> to vector<2xf32>
    %90 = vector.shape_cast %89 : vector<2xf32> to vector<2x1xf32>
    %91 = vector.broadcast %90 : vector<2x1xf32> to vector<2x8xf32>
    %92 = arith.subf %88, %91 : vector<2x8xf32>
    %93 = math.exp %92 : vector<2x8xf32>
    %cst_37 = arith.constant dense<0.000000e+00> : vector<2xf32>
    %94 = vector.multi_reduction <add>, %93, %cst_37 [1] : vector<2x8xf32> to vector<2xf32>
    %95 = vector.shape_cast %94 : vector<2xf32> to vector<2x1xf32>
    %96 = math.log %95 : vector<2x1xf32>
    %97 = vector.broadcast %96 : vector<2x1xf32> to vector<2x8xf32>
    %98 = arith.subf %92, %97 : vector<2x8xf32>
    %99 = arith.index_cast %c3_i32 : i32 to index
    %c0_38 = arith.constant 0 : index
    %c0_39 = arith.constant 0 : index
    %100 = vector.load %arg6[%99, %c0_38, %c0_39] : memref<8x2x8xf32, #tpu.memory_space<vmem>>, vector<1x2x8xf32>
    %101 = vector.shape_cast %100 : vector<1x2x8xf32> to vector<2x8xf32>
    %102 = vector.shape_cast %98 : vector<2x8xf32> to vector<1x2x8xf32>
    tpu.vector_store %arg6[%99, %c0_38, %c0_39], %102 {strides = array<i32>} : memref<8x2x8xf32, #tpu.memory_space<vmem>>, vector<1x2x8xf32>,
    %c4_i32 = arith.constant 4 : i32
    %103 = arith.index_cast %c4_i32 : i32 to index
    %c0_40 = arith.constant 0 : index
    %c0_41 = arith.constant 0 : index
    %104 = vector.load %arg1[%103, %c0_40, %c0_41] : memref<8x2x16xf32, #tpu.memory_space<vmem>>, vector<1x2x16xf32>
    %105 = vector.shape_cast %104 : vector<1x2x16xf32> to vector<2x16xf32>
    %cst_42 = arith.constant dense<0.000000e+00> : vector<2x40xf32>
    %106 = tpu.matmul %105, %3, %cst_42 {dimension_numbers = #tpu.dot_dimension_numbers<[1], [0], [0], [1], [0, 0, 1, 1], [], []>} : vector<2x16xf32>, vector<16x40xf32>, vector<2x40xf32> -> vector<2x40xf32>
    %cst_43 = arith.constant dense<0.000000e+00> : vector<2x40xf32>
    %107 = tpu.matmul %87, %4, %cst_43 {dimension_numbers = #tpu.dot_dimension_numbers<[1], [0], [0], [1], [0, 0, 1, 1], [], []>} : vector<2x32xf32>, vector<32x40xf32>, vector<2x40xf32> -> vector<2x40xf32>
    %108 = arith.addf %106, %107 : vector<2x40xf32>
    %109 = vector.broadcast %5 : vector<1x40xf32> to vector<2x40xf32>
    %110 = arith.addf %108, %109 : vector<2x40xf32>
    %111 = vector.extract_strided_slice %110 {offsets = [0, 0], sizes = [2, 32], strides = [1, 1]} : vector<2x40xf32> to vector<2x32xf32>
    %112 = vector.extract_strided_slice %110 {offsets = [0, 32], sizes = [2, 8], strides = [1, 1]} : vector<2x40xf32> to vector<2x8xf32>
    %cst_44 = arith.constant dense<0xFF800000> : vector<2xf32>
    %113 = vector.multi_reduction <maximumf>, %112, %cst_44 [1] : vector<2x8xf32> to vector<2xf32>
    %114 = vector.shape_cast %113 : vector<2xf32> to vector<2x1xf32>
    %115 = vector.broadcast %114 : vector<2x1xf32> to vector<2x8xf32>
    %116 = arith.subf %112, %115 : vector<2x8xf32>
    %117 = math.exp %116 : vector<2x8xf32>
    %cst_45 = arith.constant dense<0.000000e+00> : vector<2xf32>
    %118 = vector.multi_reduction <add>, %117, %cst_45 [1] : vector<2x8xf32> to vector<2xf32>
    %119 = vector.shape_cast %118 : vector<2xf32> to vector<2x1xf32>
    %120 = math.log %119 : vector<2x1xf32>
    %121 = vector.broadcast %120 : vector<2x1xf32> to vector<2x8xf32>
    %122 = arith.subf %116, %121 : vector<2x8xf32>
    %123 = arith.index_cast %c4_i32 : i32 to index
    %c0_46 = arith.constant 0 : index
    %c0_47 = arith.constant 0 : index
    %124 = vector.load %arg6[%123, %c0_46, %c0_47] : memref<8x2x8xf32, #tpu.memory_space<vmem>>, vector<1x2x8xf32>
    %125 = vector.shape_cast %124 : vector<1x2x8xf32> to vector<2x8xf32>
    %126 = vector.shape_cast %122 : vector<2x8xf32> to vector<1x2x8xf32>
    tpu.vector_store %arg6[%123, %c0_46, %c0_47], %126 {strides = array<i32>} : memref<8x2x8xf32, #tpu.memory_space<vmem>>, vector<1x2x8xf32>,
    %c5_i32 = arith.constant 5 : i32
    %127 = arith.index_cast %c5_i32 : i32 to index
    %c0_48 = arith.constant 0 : index
    %c0_49 = arith.constant 0 : index
    %128 = vector.load %arg1[%127, %c0_48, %c0_49] : memref<8x2x16xf32, #tpu.memory_space<vmem>>, vector<1x2x16xf32>
    %129 = vector.shape_cast %128 : vector<1x2x16xf32> to vector<2x16xf32>
    %cst_50 = arith.constant dense<0.000000e+00> : vector<2x40xf32>
    %130 = tpu.matmul %129, %3, %cst_50 {dimension_numbers = #tpu.dot_dimension_numbers<[1], [0], [0], [1], [0, 0, 1, 1], [], []>} : vector<2x16xf32>, vector<16x40xf32>, vector<2x40xf32> -> vector<2x40xf32>
    %cst_51 = arith.constant dense<0.000000e+00> : vector<2x40xf32>
    %131 = tpu.matmul %111, %4, %cst_51 {dimension_numbers = #tpu.dot_dimension_numbers<[1], [0], [0], [1], [0, 0, 1, 1], [], []>} : vector<2x32xf32>, vector<32x40xf32>, vector<2x40xf32> -> vector<2x40xf32>
    %132 = arith.addf %130, %131 : vector<2x40xf32>
    %133 = vector.broadcast %5 : vector<1x40xf32> to vector<2x40xf32>
    %134 = arith.addf %132, %133 : vector<2x40xf32>
    %135 = vector.extract_strided_slice %134 {offsets = [0, 0], sizes = [2, 32], strides = [1, 1]} : vector<2x40xf32> to vector<2x32xf32>
    %136 = vector.extract_strided_slice %134 {offsets = [0, 32], sizes = [2, 8], strides = [1, 1]} : vector<2x40xf32> to vector<2x8xf32>
    %cst_52 = arith.constant dense<0xFF800000> : vector<2xf32>
    %137 = vector.multi_reduction <maximumf>, %136, %cst_52 [1] : vector<2x8xf32> to vector<2xf32>
    %138 = vector.shape_cast %137 : vector<2xf32> to vector<2x1xf32>
    %139 = vector.broadcast %138 : vector<2x1xf32> to vector<2x8xf32>
    %140 = arith.subf %136, %139 : vector<2x8xf32>
    %141 = math.exp %140 : vector<2x8xf32>
    %cst_53 = arith.constant dense<0.000000e+00> : vector<2xf32>
    %142 = vector.multi_reduction <add>, %141, %cst_53 [1] : vector<2x8xf32> to vector<2xf32>
    %143 = vector.shape_cast %142 : vector<2xf32> to vector<2x1xf32>
    %144 = math.log %143 : vector<2x1xf32>
    %145 = vector.broadcast %144 : vector<2x1xf32> to vector<2x8xf32>
    %146 = arith.subf %140, %145 : vector<2x8xf32>
    %147 = arith.index_cast %c5_i32 : i32 to index
    %c0_54 = arith.constant 0 : index
    %c0_55 = arith.constant 0 : index
    %148 = vector.load %arg6[%147, %c0_54, %c0_55] : memref<8x2x8xf32, #tpu.memory_space<vmem>>, vector<1x2x8xf32>
    %149 = vector.shape_cast %148 : vector<1x2x8xf32> to vector<2x8xf32>
    %150 = vector.shape_cast %146 : vector<2x8xf32> to vector<1x2x8xf32>
    tpu.vector_store %arg6[%147, %c0_54, %c0_55], %150 {strides = array<i32>} : memref<8x2x8xf32, #tpu.memory_space<vmem>>, vector<1x2x8xf32>,
    %c6_i32 = arith.constant 6 : i32
    %151 = arith.index_cast %c6_i32 : i32 to index
    %c0_56 = arith.constant 0 : index
    %c0_57 = arith.constant 0 : index
    %152 = vector.load %arg1[%151, %c0_56, %c0_57] : memref<8x2x16xf32, #tpu.memory_space<vmem>>, vector<1x2x16xf32>
    %153 = vector.shape_cast %152 : vector<1x2x16xf32> to vector<2x16xf32>
    %cst_58 = arith.constant dense<0.000000e+00> : vector<2x40xf32>
    %154 = tpu.matmul %153, %3, %cst_58 {dimension_numbers = #tpu.dot_dimension_numbers<[1], [0], [0], [1], [0, 0, 1, 1], [], []>} : vector<2x16xf32>, vector<16x40xf32>, vector<2x40xf32> -> vector<2x40xf32>
    %cst_59 = arith.constant dense<0.000000e+00> : vector<2x40xf32>
    %155 = tpu.matmul %135, %4, %cst_59 {dimension_numbers = #tpu.dot_dimension_numbers<[1], [0], [0], [1], [0, 0, 1, 1], [], []>} : vector<2x32xf32>, vector<32x40xf32>, vector<2x40xf32> -> vector<2x40xf32>
    %156 = arith.addf %154, %155 : vector<2x40xf32>
    %157 = vector.broadcast %5 : vector<1x40xf32> to vector<2x40xf32>
    %158 = arith.addf %156, %157 : vector<2x40xf32>
    %159 = vector.extract_strided_slice %158 {offsets = [0, 0], sizes = [2, 32], strides = [1, 1]} : vector<2x40xf32> to vector<2x32xf32>
    %160 = vector.extract_strided_slice %158 {offsets = [0, 32], sizes = [2, 8], strides = [1, 1]} : vector<2x40xf32> to vector<2x8xf32>
    %cst_60 = arith.constant dense<0xFF800000> : vector<2xf32>
    %161 = vector.multi_reduction <maximumf>, %160, %cst_60 [1] : vector<2x8xf32> to vector<2xf32>
    %162 = vector.shape_cast %161 : vector<2xf32> to vector<2x1xf32>
    %163 = vector.broadcast %162 : vector<2x1xf32> to vector<2x8xf32>
    %164 = arith.subf %160, %163 : vector<2x8xf32>
    %165 = math.exp %164 : vector<2x8xf32>
    %cst_61 = arith.constant dense<0.000000e+00> : vector<2xf32>
    %166 = vector.multi_reduction <add>, %165, %cst_61 [1] : vector<2x8xf32> to vector<2xf32>
    %167 = vector.shape_cast %166 : vector<2xf32> to vector<2x1xf32>
    %168 = math.log %167 : vector<2x1xf32>
    %169 = vector.broadcast %168 : vector<2x1xf32> to vector<2x8xf32>
    %170 = arith.subf %164, %169 : vector<2x8xf32>
    %171 = arith.index_cast %c6_i32 : i32 to index
    %c0_62 = arith.constant 0 : index
    %c0_63 = arith.constant 0 : index
    %172 = vector.load %arg6[%171, %c0_62, %c0_63] : memref<8x2x8xf32, #tpu.memory_space<vmem>>, vector<1x2x8xf32>
    %173 = vector.shape_cast %172 : vector<1x2x8xf32> to vector<2x8xf32>
    %174 = vector.shape_cast %170 : vector<2x8xf32> to vector<1x2x8xf32>
    tpu.vector_store %arg6[%171, %c0_62, %c0_63], %174 {strides = array<i32>} : memref<8x2x8xf32, #tpu.memory_space<vmem>>, vector<1x2x8xf32>,
    %c7_i32 = arith.constant 7 : i32
    %175 = arith.index_cast %c7_i32 : i32 to index
    %c0_64 = arith.constant 0 : index
    %c0_65 = arith.constant 0 : index
    %176 = vector.load %arg1[%175, %c0_64, %c0_65] : memref<8x2x16xf32, #tpu.memory_space<vmem>>, vector<1x2x16xf32>
    %177 = vector.shape_cast %176 : vector<1x2x16xf32> to vector<2x16xf32>
    %cst_66 = arith.constant dense<0.000000e+00> : vector<2x40xf32>
    %178 = tpu.matmul %177, %3, %cst_66 {dimension_numbers = #tpu.dot_dimension_numbers<[1], [0], [0], [1], [0, 0, 1, 1], [], []>} : vector<2x16xf32>, vector<16x40xf32>, vector<2x40xf32> -> vector<2x40xf32>
    %cst_67 = arith.constant dense<0.000000e+00> : vector<2x40xf32>
    %179 = tpu.matmul %159, %4, %cst_67 {dimension_numbers = #tpu.dot_dimension_numbers<[1], [0], [0], [1], [0, 0, 1, 1], [], []>} : vector<2x32xf32>, vector<32x40xf32>, vector<2x40xf32> -> vector<2x40xf32>
    %180 = arith.addf %178, %179 : vector<2x40xf32>
    %181 = vector.broadcast %5 : vector<1x40xf32> to vector<2x40xf32>
    %182 = arith.addf %180, %181 : vector<2x40xf32>
    %183 = vector.extract_strided_slice %182 {offsets = [0, 0], sizes = [2, 32], strides = [1, 1]} : vector<2x40xf32> to vector<2x32xf32>
    %184 = vector.extract_strided_slice %182 {offsets = [0, 32], sizes = [2, 8], strides = [1, 1]} : vector<2x40xf32> to vector<2x8xf32>
    %cst_68 = arith.constant dense<0xFF800000> : vector<2xf32>
    %185 = vector.multi_reduction <maximumf>, %184, %cst_68 [1] : vector<2x8xf32> to vector<2xf32>
    %186 = vector.shape_cast %185 : vector<2xf32> to vector<2x1xf32>
    %187 = vector.broadcast %186 : vector<2x1xf32> to vector<2x8xf32>
    %188 = arith.subf %184, %187 : vector<2x8xf32>
    %189 = math.exp %188 : vector<2x8xf32>
    %cst_69 = arith.constant dense<0.000000e+00> : vector<2xf32>
    %190 = vector.multi_reduction <add>, %189, %cst_69 [1] : vector<2x8xf32> to vector<2xf32>
    %191 = vector.shape_cast %190 : vector<2xf32> to vector<2x1xf32>
    %192 = math.log %191 : vector<2x1xf32>
    %193 = vector.broadcast %192 : vector<2x1xf32> to vector<2x8xf32>
    %194 = arith.subf %188, %193 : vector<2x8xf32>
    %195 = arith.index_cast %c7_i32 : i32 to index
    %c0_70 = arith.constant 0 : index
    %c0_71 = arith.constant 0 : index
    %196 = vector.load %arg6[%195, %c0_70, %c0_71] : memref<8x2x8xf32, #tpu.memory_space<vmem>>, vector<1x2x8xf32>
    %197 = vector.shape_cast %196 : vector<1x2x8xf32> to vector<2x8xf32>
    %198 = vector.shape_cast %194 : vector<2x8xf32> to vector<1x2x8xf32>
    tpu.vector_store %arg6[%195, %c0_70, %c0_71], %198 {strides = array<i32>} : memref<8x2x8xf32, #tpu.memory_space<vmem>>, vector<1x2x8xf32>,
    %c8_i32 = arith.constant 8 : i32
    %c0_72 = arith.constant 0 : index
    %c0_73 = arith.constant 0 : index
    %199 = vector.load %arg7[%c0_72, %c0_73] : memref<2x32xf32, #tpu.memory_space<vmem>>, vector<2x32xf32>
    tpu.vector_store %arg7[%c0_72, %c0_73], %183 {strides = array<i32>} : memref<2x32xf32, #tpu.memory_space<vmem>>, vector<2x32xf32>,
    return
  }
  func.func @transform_0(%arg0: i32) -> (i32, i32, i32) {
    %c0_i32 = arith.constant 0 : i32
    %c0_i32_0 = arith.constant 0 : i32
    %c0_i32_1 = arith.constant 0 : i32
    return %arg0, %c0_i32, %c0_i32_0 : i32, i32, i32
  }
  func.func @transform_1(%arg0: i32) -> (i32, i32) {
    %c0_i32 = arith.constant 0 : i32
    %c0_i32_0 = arith.constant 0 : i32
    %c0_i32_1 = arith.constant 0 : i32
    return %c0_i32, %c0_i32_0 : i32, i32
  }
  func.func @transform_2(%arg0: i32) -> (i32, i32) {
    %c0_i32 = arith.constant 0 : i32
    %c0_i32_0 = arith.constant 0 : i32
    %c0_i32_1 = arith.constant 0 : i32
    return %c0_i32, %c0_i32_0 : i32, i32
  }
  func.func @transform_3(%arg0: i32) -> (i32, i32) {
    %c0_i32 = arith.constant 0 : i32
    %c0_i32_0 = arith.constant 0 : i32
    %c0_i32_1 = arith.constant 0 : i32
    return %c0_i32, %c0_i32_0 : i32, i32
  }
  func.func @transform_4(%arg0: i32) -> (i32, i32) {
    %c0_i32 = arith.constant 0 : i32
    %c0_i32_0 = arith.constant 0 : i32
    %c0_i32_1 = arith.constant 0 : i32
    return %c0_i32, %c0_i32_0 : i32, i32
  }
  func.func @transform_5(%arg0: i32) -> (i32, i32, i32) {
    %c0_i32 = arith.constant 0 : i32
    %c0_i32_0 = arith.constant 0 : i32
    %c0_i32_1 = arith.constant 0 : i32
    return %arg0, %c0_i32, %c0_i32_0 : i32, i32, i32
  }
  func.func @transform_6(%arg0: i32) -> (i32, i32) {
    %c0_i32 = arith.constant 0 : i32
    %c0_i32_0 = arith.constant 0 : i32
    %c0_i32_1 = arith.constant 0 : i32
    return %c0_i32, %c0_i32_0 : i32, i32
  }
}

</mosaic_0001>

<bundles_post_ra>
// kernel: tpu_custom_call.1
= control target key start
LH: loop header
LB: loop body
LE: loop exit
PB: predicated region body
PF: predicated region fallthrough
CT: control target
= control target key end

     0   :  { %12 = vsyncpa [#allocation3], 0  ;;  %s2235_s0 = inlined_call_operand.hbm [shape: f32[8,2,16], index: 0, kind: input, shape index: {}]   ;;  %s2236_s1 = inlined_call_operand.vmem [shape: f32[2,32], index: 1, kind: input, shape index: {}]   ;;  %s2237_s2 = inlined_call_operand.hbm [shape: f32[16,40], index: 2, kind: input, shape index: {}]   ;;  %s2238_s3 = inlined_call_operand.hbm [shape: f32[32,40], index: 3, kind: input, shape index: {}]   ;;  %s2239_s4 = inlined_call_operand.vmem [shape: f32[1,40], index: 4, kind: input, shape index: {}]   ;;  %s2240_s5 = inlined_call_operand.hbm [shape: f32[8,2,8], index: 5, kind: output, shape index: {0}]   ;;  %s2241_s6 = inlined_call_operand.hbm [shape: f32[2,32], index: 6, kind: output, shape index: {1}]  }
   0x1   :  { %13 = vsyncpa [#allocation6], 0 }
   0x2   :  { %14 = vsyncpa [#allocation4], 0 }
   0x3   :  { %15 = vsyncpa [#allocation10], 0  ;;  %s1950_s21 = smov [#allocation5]   ;;  %s1832_s25 = scalar_lea.hbm %s2237_s2, 256 }
   0x4   :  { %s35_s22 = sshll.u32 %s1950_s21, 4  ;;  %p1833_p0 = scmp.ne.s32.totalorder %s2237_s2, %s1832_s25  ;;  %s36_s22 = int_to_ptr.vmem [resolvable:$true] %s35_s22 }
   0x5   :  { %p1836_p1 = scmp.lt.u32.totalorder %s1832_s25, %s2237_s2 }
   0x7   :  { %p1838_p2 = pnand %p1836_p1, %p1833_p0 }
   0x9   :  { %1841 = shalt.err (!%p1838_p2)
}
   0xa   :  { %s1842_s30 = scalar_lea.vmem %s36_s22, 256  ;;  %p1847_p4 = scmp.lt.s32.totalorder %s36_s22, %s36_s22 }
   0xb   :  { %p1843_p3 = scmp.ne.s32.totalorder %s36_s22, %s1842_s30  ;;  %p1848_p5 = scmp.lt.s32.totalorder %s1842_s30, %s1842_s30 }
   0xd   :  { %p1849_p6 = por %p1848_p5, %p1847_p4 }
   0xf   :  { %p1850_p7 = pnand %p1849_p6, %p1843_p3 }
  0x11   :  { %1853 = shalt.err (!%p1850_p7)
}
  0x12   :  { %s1951_s7 = smov 128   ;;  %s1952_s8 = smov 8  }
  0x13   :  { %41 = dma.hbm_to_vmem [thread:$0]  %s2237_s2, 256, %s36_s22, [#allocation6], %s1951_s7, %s1951_s7, %s1952_s8  }
  0x14   :  { %s1953_s11 = smov [#allocation2]   ;;  %s1854_s15 = scalar_lea.hbm %s2235_s0, 256 }
  0x15   :  { %s21_s12 = sshll.u32 %s1953_s11, 4  ;;  %p1855_p8 = scmp.ne.s32.totalorder %s2235_s0, %s1854_s15  ;;  %s22_s12 = int_to_ptr.vmem [resolvable:$true] %s21_s12 }
  0x16   :  { %p1858_p9 = scmp.lt.u32.totalorder %s1854_s15, %s2235_s0 }
  0x18   :  { %p1860_p10 = pnand %p1858_p9, %p1855_p8 }
  0x1a   :  { %1863 = shalt.err (!%p1860_p10)
}
  0x1b   :  { %s1864_s20 = scalar_lea.vmem %s22_s12, 256  ;;  %p1869_p12 = scmp.lt.s32.totalorder %s22_s12, %s22_s12 }
  0x1c   :  { %p1865_p11 = scmp.ne.s32.totalorder %s22_s12, %s1864_s20  ;;  %p1870_p13 = scmp.lt.s32.totalorder %s1864_s20, %s1864_s20 }
  0x1e   :  { %p1871_p0 = por %p1870_p13, %p1869_p12 }
  0x20   :  { %p1872_p1 = pnand %p1871_p0, %p1865_p11 }
  0x22   :  { %1875 = shalt.err (!%p1872_p1)
}
  0x23   :  { %s1954_s2 = smov 32   ;;  %s1955_s21 = smov 2  }
  0x24   :  { %27 = dma.hbm_to_vmem [thread:$0]  %s2235_s0, 256, %s22_s12, [#allocation3], %s1954_s2, %s1954_s2, %s1955_s21  }
  0x25   :  { %s1956_s24 = smov [#allocation7]   ;;  %s1876_s28 = scalar_lea.hbm %s2238_s3, 512 }
  0x26   :  { %s47_s25 = sshll.u32 %s1956_s24, 4  ;;  %p1877_p2 = scmp.ne.s32.totalorder %s2238_s3, %s1876_s28  ;;  %s48_s25 = int_to_ptr.vmem [resolvable:$true] %s47_s25 }
  0x27   :  { %p1880_p3 = scmp.lt.u32.totalorder %s1876_s28, %s2238_s3 }
  0x29   :  { %p1882_p4 = pnand %p1880_p3, %p1877_p2 }
  0x2b   :  { %1885 = shalt.err (!%p1882_p4)
}
  0x2c   :  { %s1886_s11 = scalar_lea.vmem %s48_s25, 512  ;;  %p1891_p6 = scmp.lt.s32.totalorder %s48_s25, %s48_s25 }
  0x2d   :  { %p1887_p5 = scmp.ne.s32.totalorder %s48_s25, %s1886_s11  ;;  %p1892_p7 = scmp.lt.s32.totalorder %s1886_s11, %s1886_s11 }
  0x2f   :  { %p1893_p8 = por %p1892_p7, %p1891_p6 }
  0x31   :  { %p1894_p9 = pnand %p1893_p8, %p1887_p5 }
  0x33   :  { %1897 = shalt.err (!%p1894_p9)
}
  0x34   :  { %53 = dma.hbm_to_vmem [thread:$0]  %s2238_s3, 512, %s48_s25, [#allocation6], %s1951_s7, %s1951_s7, %s1952_s8  }
  0x35   :  { %1942 = dma.done.wait [#allocation3], 256  }
  0x36   :  { %1943 = vsyncadd [#allocation3], 4294967040 }
  0x37   :  { %1944 = dma.done.wait [#allocation6], 768  }
  0x38   :  { %1945 = vsyncadd [#allocation6], 4294966528  ;;  %v1957_v0 = vmov 0.0|0.0   ;;  %vm1958_vm0 = vmmov 0   ;;  %v1959_v1 = vmov 0.0   ;;  %v74_v2 = vld [vmem:[#allocation7] sm:$0xff] }
  0x39   :  { %1715 = vmatprep.subr.bf16.mxu0 %v1957_v0  ;;  %1721 = vmatprep.subr.bf16.mxu1 %v1957_v0  ;;  %v75_v3 = vld [vmem:[#allocation7 + $0x8] sm:$0xff]  ;;  %v72_v4 = vld [vmem:[#allocation5] sm:$0xff]  ;;  %vm70_vm1 = vcmask 254976   ;;  %v73_v6 = vld [vmem:[#allocation5 + $0x8] sm:$0xff]  ;;  %vm155_vm2 = vcmask 130048   ;;  %vm81_vm3 = vcmask 261120  }
  0x3a   :  { %1586 = vmatprep.mubr.msk.f32.mxu1 %vm1958_vm0, %v1959_v1  ;;  %1579 = vmatprep.mubr.msk.f32.mxu0 %vm1958_vm0, %v1959_v1  ;;  %v2049_v5 = vpack.c.bf16 %v75_v3, %v74_v2  ;;  %v76_v7 = vld [vmem:[#allocation7 + $0x10] sm:$0xff]  ;;  %v77_v8 = vld [vmem:[#allocation7 + $0x18] sm:$0xff]  ;;  %v2051_v9 = vpack.c.bf16 %v73_v6, %v72_v4  ;;  %v69_v10 = vld [vmem:[%s2236_s1] sm:$0x3]  ;;  %vm236_vm4 = vcmask 320768   ;;  %vm247_vm5 = vcmask 58368  }
  0x3b   :  { %v2057_v11 = vpack.c.bf16 %v77_v8, %v76_v7  ;;  %71 = vst.msk [vmem:[#allocation9] sm:$0x3] %vm70_vm1, %v69_v10  ;;  %v80_v12 = vld [vmem:[#allocation2] sm:$0x3]  ;;  %v260_v14 = vld [vmem:[#allocation2 + $0x2] sm:$0x3] }
  0x3c   :  { %1717 = vmatpush3.bf16.msra.mxu0 %v2049_v5  ;;  %1723 = vmatpush3.bf16.msra.mxu1 %v2051_v9  ;;  %v2087_v17 = vld [vmem:[%s2239_s4] ss:$0 sm:$0xff]  ;;  %v431_v25 = vld [vmem:[#allocation2 + $0x4] sm:$0x3]  ;;  %s1960_s4 = smov 96   ;;  %s1961_s13 = smov [#allocation9]  }
  0x3d   :  { %1718 = vmatprep.subr.bf16.mxu0 %v1957_v0  ;;  %1724 = vmatprep.subr.bf16.mxu1 %v1957_v0  ;;  %v602_v39 = vld [vmem:[#allocation2 + $0x6] sm:$0x3]  ;;  %v773_v57 = vld [vmem:[#allocation2 + $0x8] sm:$0x3]  ;;  %s1476_s14 = sshll.u32 %s1961_s13, 4  ;;  %s1477_s14 = int_to_ptr.vmem [resolvable:$true] %s1476_s14 }
  0x3e   :  { %s1898_s15 = scalar_lea.vmem %s1477_s14, 32  ;;  %p1903_p11 = scmp.lt.s32.totalorder %s1477_s14, %s1477_s14 }
  0x3f   :  { %1587 = vmatmul.mubr.msk.f32.vlgmr.msra.gmra.mrb[0].mxu1 %vm155_vm2, %v80_v12  ;;  %p1899_p10 = scmp.ne.s32.totalorder %s1477_s14, %s1898_s15  ;;  %p1904_p12 = scmp.lt.s32.totalorder %s1898_s15, %s1898_s15 }
  0x40   :  { %1720 = vmatpush3.bf16.msra.mxu0 %v2057_v11  ;;  %1726 = vmatpush3.bf16.msra.mxu1 %v2049_v5 }
  0x41   :  { %1730 = vmatprep.subr.bf16.mxu0 %v1957_v0  ;;  %1727 = vmatprep.subr.bf16.mxu1 %v1957_v0  ;;  %p1905_p13 = por %p1904_p12, %p1903_p11 }
  0x42   :  { %1597 = vmatprep.mubr.msk.f32.mxu1 %vm1958_vm0, %v1959_v1  ;;  %v79_v13 = vld [vmem:[#allocation9] sm:$0x3] }
  0x43   :  { %1580 = vmatmul.mubr.msk.f32.vlgmr.msra.gmra.mrb[0].mxu0 %vm81_vm3, %v79_v13  ;;  %p1906_p0 = pnand %p1905_p13, %p1899_p10 }
  0x44   :  { %1732 = vmatpush3.bf16.msra.mxu0 %v2051_v9  ;;  %1729 = vmatpush3.bf16.msra.mxu1 %v2057_v11 }
  0x45   :  { %1604 = vmatprep.mubr.msk.f32.mxu0 %vm1958_vm0, %v1959_v1  ;;  %1733 = vmatprep.subr.bf16.mxu0 %v1957_v0 }
  0x46   :  { %1739 = vmatprep.subr.bf16.mxu1 %v1957_v0 }
  0x47   :  { %1605 = vmatmul.mubr.msk.f32.vlgmr.msra.gmra.mrb[2].mxu0 %vm155_vm2, %v260_v14 }
  0x48   :  { %1735 = vmatpush3.bf16.msra.mxu0 %v2049_v5  ;;  %1615 = vmatprep.mubr.msk.f32.mxu0 %vm1958_vm0, %v1959_v1 }
  0x49   :  { %1736 = vmatprep.subr.bf16.mxu0 %v1957_v0 }
  0x4c   :  { %1738 = vmatpush3.bf16.msra.mxu0 %v2057_v11 }
  0x4d   :  { %1748 = vmatprep.subr.bf16.mxu0 %v1957_v0 }
 0x112   :  { %v225_v15 = vpop.f32.mrb[0].mxu1 }
 0x113   :  { %v1588_v16 = vpop.f32.mrb[1].mxu1 }
 0x116   :  { %v151_v18 = vpop.f32.mrb[0].mxu0 }
 0x117   :  { %v226_v19 = vadd.f32 %v225_v15, %v151_v18  ;;  %v1581_v20 = vpop.f32.mrb[1].mxu0  ;;  %v944_v18 = vld [vmem:[#allocation2 + $0xa] sm:$0x3] }
 0x119   :  { %v235_v21 = vadd.f32 %v2087_v17, %v226_v19 }
 0x11a   :  { %v403_v23 = vpop.f32.mrb[2].mxu0 }
 0x11b   :  { %1598 = vmatmul.mubr.msk.f32.vlgmr.msra.gmra.mrb[2].mxu1 %vm81_vm3, %v235_v21  ;;  %v237_v22 = vsel %vm236_vm4, %v235_v21, -inf  ;;  %v1606_v24 = vpop.f32.mrb[3].mxu0 }
 0x11c   :  { %238 = vmax.xlane.f32.xlu0 %v237_v22  ;;  %1741 = vmatpush3.bf16.msra.mxu1 %v2051_v9 }
 0x11d   :  { %1622 = vmatprep.mubr.msk.f32.mxu1 %vm1958_vm0, %v1959_v1  ;;  %1742 = vmatprep.subr.bf16.mxu1 %v1957_v0 }
 0x11f   :  { %1623 = vmatmul.mubr.msk.f32.vlgmr.msra.gmra.mrb[4].mxu1 %vm155_vm2, %v431_v25 }
 0x120   :  { %1744 = vmatpush3.bf16.msra.mxu1 %v2049_v5  ;;  %1633 = vmatprep.mubr.msk.f32.mxu1 %vm1958_vm0, %v1959_v1 }
 0x121   :  { %1745 = vmatprep.subr.bf16.mxu1 %v1957_v0 }
 0x124   :  { %1747 = vmatpush3.bf16.msra.mxu1 %v2057_v11 }
 0x125   :  { %1757 = vmatprep.subr.bf16.mxu1 %v1957_v0 }
 0x1a9   :  { %v239_v26 = vpop.xlane.xlu0 %238 }
 0x1aa   :  { %v240_v27 = vsub.f32 %v235_v21, %v239_v26 }
 0x1ac   :  { %v241_v28 = vmul.f32 1.442695, %v240_v27 }
 0x1ae   :  { %1800 = vpow2.f32 %v241_v28 }
 0x1b8   :  { %v1801_v29 = vpop.eup %1800 }
 0x1b9   :  { %244 = vrot.lane.b32.xlu0 %v1801_v29, %s1960_s4 }
 0x1ee   :  { %v330_v30 = vpop.f32.mrb[2].mxu1 }
 0x1ef   :  { %v404_v31 = vadd.f32 %v403_v23, %v330_v30  ;;  %v1599_v32 = vpop.f32.mrb[3].mxu1 }
 0x1f1   :  { %v407_v33 = vadd.f32 %v2087_v17, %v404_v31  ;;  %v1115_v31 = vld [vmem:[#allocation2 + $0xc] sm:$0x3] }
 0x1f2   :  { %v574_v37 = vpop.f32.mrb[4].mxu1 }
 0x1f3   :  { %1616 = vmatmul.mubr.msk.f32.vlgmr.msra.gmra.mrb[4].mxu0 %vm81_vm3, %v407_v33  ;;  %v408_v34 = vsel %vm236_vm4, %v407_v33, -inf  ;;  %v1624_v38 = vpop.f32.mrb[5].mxu1 }
 0x1f4   :  { %409 = vmax.xlane.f32.xlu1 %v408_v34  ;;  %1750 = vmatpush3.bf16.msra.mxu0 %v2051_v9  ;;  %v1286_v38 = vld [vmem:[#allocation2 + $0xe] sm:$0x3] }
 0x1f5   :  { %1640 = vmatprep.mubr.msk.f32.mxu0 %vm1958_vm0, %v1959_v1  ;;  %1751 = vmatprep.subr.bf16.mxu0 %v1957_v0 }
 0x1f7   :  { %1641 = vmatmul.mubr.msk.f32.vlgmr.msra.gmra.mrb[6].mxu0 %vm155_vm2, %v602_v39 }
 0x1f8   :  { %1753 = vmatpush3.bf16.msra.mxu0 %v2049_v5  ;;  %1651 = vmatprep.mubr.msk.f32.mxu0 %vm1958_vm0, %v1959_v1 }
 0x1f9   :  { %1754 = vmatprep.subr.bf16.mxu0 %v1957_v0 }
 0x1fc   :  { %1756 = vmatpush3.bf16.msra.mxu0 %v2057_v11 }
 0x1fd   :  { %1766 = vmatprep.subr.bf16.mxu0 %v1957_v0 }
 0x22b   :  { %v245_v35 = vpop.permute.xlu0 %244 }
 0x22c   :  { %v248_v36 = vsel %vm247_vm5, %v245_v35, 0.0 }
 0x22d   :  { %249 = vadd.xlane.f32.xlu1 %v248_v36 }
 0x281   :  { %v410_v40 = vpop.xlane.xlu1 %409 }
 0x282   :  { %v411_v41 = vsub.f32 %v407_v33, %v410_v40 }
 0x284   :  { %v412_v42 = vmul.f32 1.442695, %v411_v41 }
 0x286   :  { %1802 = vpow2.f32 %v412_v42 }
 0x290   :  { %v1803_v43 = vpop.eup %1802 }
 0x291   :  { %415 = vrot.lane.b32.xlu0 %v1803_v43, %s1960_s4 }
 0x2ba   :  { %v250_v44 = vpop.xlane.xlu1 %249 }
 0x2bb   :  { %1804 = vlog2.f32 %v250_v44 }
 0x2c5   :  { %v1805_v45 = vpop.eup %1804 }
 0x2c6   :  { %v252_v46 = vmul.f32 0.6931472, %v1805_v45  ;;  %v501_v47 = vpop.f32.mrb[4].mxu0 }
 0x2c7   :  { %v575_v48 = vadd.f32 %v574_v37, %v501_v47  ;;  %v1617_v49 = vpop.f32.mrb[5].mxu0 }
 0x2c8   :  { %v253_v50 = vsub.f32 %v240_v27, %v252_v46 }
 0x2c9   :  { %v578_v51 = vadd.f32 %v2087_v17, %v575_v48 }
 0x2ca   :  { %255 = vrot.lane.b32.xlu1 %v253_v50, %s1960_s4  ;;  %v745_v55 = vpop.f32.mrb[6].mxu0 }
 0x2cb   :  { %1634 = vmatmul.mubr.msk.f32.vlgmr.msra.gmra.mrb[6].mxu1 %vm81_vm3, %v578_v51  ;;  %v579_v52 = vsel %vm236_vm4, %v578_v51, -inf  ;;  %v1642_v56 = vpop.f32.mrb[7].mxu0 }
 0x2cc   :  { %580 = vmax.xlane.f32.xlu0 %v579_v52  ;;  %1759 = vmatpush3.bf16.msra.mxu1 %v2051_v9 }
 0x2cd   :  { %1658 = vmatprep.mubr.msk.f32.mxu1 %vm1958_vm0, %v1959_v1  ;;  %1760 = vmatprep.subr.bf16.mxu1 %v1957_v0 }
 0x2cf   :  { %1659 = vmatmul.mubr.msk.f32.vlgmr.msra.gmra.mrb[8].mxu1 %vm155_vm2, %v773_v57 }
 0x2d0   :  { %1762 = vmatpush3.bf16.msra.mxu1 %v2049_v5  ;;  %1669 = vmatprep.mubr.msk.f32.mxu1 %vm1958_vm0, %v1959_v1 }
 0x2d1   :  { %1763 = vmatprep.subr.bf16.mxu1 %v1957_v0 }
 0x2d4   :  { %1765 = vmatpush3.bf16.msra.mxu1 %v2057_v11 }
 0x2d5   :  { %1775 = vmatprep.subr.bf16.mxu1 %v1957_v0 }
 0x303   :  { %v416_v53 = vpop.permute.xlu0 %415 }
 0x304   :  { %v418_v54 = vsel %vm247_vm5, %v416_v53, 0.0 }
 0x305   :  { %419 = vadd.xlane.f32.xlu0 %v418_v54 }
 0x33c   :  { %v256_v58 = vpop.permute.xlu1 %255 }
 0x33d   :  { %258 = vst.msk [vmem:[#allocation8] sm:$0x3] %vm247_vm5, %v256_v58 }
 0x359   :  { %v581_v59 = vpop.xlane.xlu0 %580 }
 0x35a   :  { %v582_v60 = vsub.f32 %v578_v51, %v581_v59 }
 0x35c   :  { %v583_v61 = vmul.f32 1.442695, %v582_v60 }
 0x35e   :  { %1806 = vpow2.f32 %v583_v61 }
 0x368   :  { %v1807_v62 = vpop.eup %1806 }
 0x369   :  { %586 = vrot.lane.b32.xlu0 %v1807_v62, %s1960_s4 }
 0x392   :  { %v420_v63 = vpop.xlane.xlu0 %419 }
 0x393   :  { %1808 = vlog2.f32 %v420_v63 }
 0x39d   :  { %v1809_v2 = vpop.eup %1808 }
 0x39e   :  { %v422_v3 = vmul.f32 0.6931472, %v1809_v2  ;;  %v672_v4 = vpop.f32.mrb[6].mxu1 }
 0x39f   :  { %v746_v6 = vadd.f32 %v745_v55, %v672_v4  ;;  %v1635_v7 = vpop.f32.mrb[7].mxu1 }
 0x3a0   :  { %v423_v8 = vsub.f32 %v411_v41, %v422_v3 }
 0x3a1   :  { %v2139_v10 = vadd.f32 %v2087_v17, %v746_v6 }
 0x3a2   :  { %425 = vrot.lane.b32.xlu1 %v423_v8, %s1960_s4  ;;  %v916_v15 = vpop.f32.mrb[8].mxu1 }
 0x3a3   :  { %1652 = vmatmul.mubr.msk.f32.vlgmr.msra.gmra.mrb[8].mxu0 %vm81_vm3, %v2139_v10  ;;  %v750_v12 = vsel %vm236_vm4, %v2139_v10, -inf  ;;  %v1660_v16 = vpop.f32.mrb[9].mxu1 }
 0x3a4   :  { %751 = vmax.xlane.f32.xlu0 %v750_v12  ;;  %1768 = vmatpush3.bf16.msra.mxu0 %v2051_v9 }
 0x3a5   :  { %1676 = vmatprep.mubr.msk.f32.mxu0 %vm1958_vm0, %v1959_v1  ;;  %1769 = vmatprep.subr.bf16.mxu0 %v1957_v0 }
 0x3a7   :  { %1677 = vmatmul.mubr.msk.f32.vlgmr.msra.gmra.mrb[10].mxu0 %vm155_vm2, %v944_v18 }
 0x3a8   :  { %1771 = vmatpush3.bf16.msra.mxu0 %v2049_v5  ;;  %1687 = vmatprep.mubr.msk.f32.mxu0 %vm1958_vm0, %v1959_v1 }
 0x3a9   :  { %1772 = vmatprep.subr.bf16.mxu0 %v1957_v0 }
 0x3ac   :  { %1774 = vmatpush3.bf16.msra.mxu0 %v2057_v11 }
 0x3ad   :  { %1784 = vmatprep.subr.bf16.mxu0 %v1957_v0 }
 0x3db   :  { %v587_v13 = vpop.permute.xlu0 %586 }
 0x3dc   :  { %v589_v14 = vsel %vm247_vm5, %v587_v13, 0.0 }
 0x3dd   :  { %590 = vadd.xlane.f32.xlu1 %v589_v14 }
 0x414   :  { %v426_v19 = vpop.permute.xlu1 %425 }
 0x415   :  { %429 = vst.msk [vmem:[#allocation8 + $0x2] sm:$0x3] %vm247_vm5, %v426_v19 }
 0x431   :  { %v752_v32 = vpop.xlane.xlu0 %751 }
 0x432   :  { %v753_v48 = vsub.f32 %v2139_v10, %v752_v32 }
 0x434   :  { %v754_v50 = vmul.f32 1.442695, %v753_v48 }
 0x46a   :  { %v591_v20 = vpop.xlane.xlu1 %590 }
 0x46b   :  { %1810 = vlog2.f32 %v591_v20 }
 0x46c   :  { %1812 = vpow2.f32 %v754_v50 }
 0x475   :  { %v1811_v21 = vpop.eup %1810 }
 0x476   :  { %v593_v22 = vmul.f32 0.6931472, %v1811_v21  ;;  %v843_v23 = vpop.f32.mrb[8].mxu0  ;;  %v1813_v51 = vpop.eup %1812 }
 0x477   :  { %v917_v24 = vadd.f32 %v916_v15, %v843_v23  ;;  %v1653_v25 = vpop.f32.mrb[9].mxu0 }
 0x478   :  { %v594_v26 = vsub.f32 %v582_v60, %v593_v22 }
 0x479   :  { %v920_v27 = vadd.f32 %v2087_v17, %v917_v24 }
 0x47a   :  { %596 = vrot.lane.b32.xlu0 %v594_v26, %s1960_s4  ;;  %v1087_v29 = vpop.f32.mrb[10].mxu0 }
 0x47b   :  { %1670 = vmatmul.mubr.msk.f32.vlgmr.msra.gmra.mrb[10].mxu1 %vm81_vm3, %v920_v27  ;;  %v921_v28 = vsel %vm236_vm4, %v920_v27, -inf  ;;  %v1678_v30 = vpop.f32.mrb[11].mxu0 }
 0x47c   :  { %922 = vmax.xlane.f32.xlu1 %v921_v28  ;;  %1777 = vmatpush3.bf16.msra.mxu1 %v2051_v9 }
 0x47d   :  { %1694 = vmatprep.mubr.msk.f32.mxu1 %vm1958_vm0, %v1959_v1  ;;  %1778 = vmatprep.subr.bf16.mxu1 %v1957_v0 }
 0x47f   :  { %1695 = vmatmul.mubr.msk.f32.vlgmr.msra.gmra.mrb[12].mxu1 %vm155_vm2, %v1115_v31 }
 0x480   :  { %1780 = vmatpush3.bf16.msra.mxu1 %v2049_v5  ;;  %1705 = vmatprep.mubr.msk.f32.mxu1 %vm1958_vm0, %v1959_v1 }
 0x481   :  { %1781 = vmatprep.subr.bf16.mxu1 %v1957_v0 }
 0x484   :  { %1783 = vmatpush3.bf16.msra.mxu1 %v2057_v11 }
 0x4ec   :  { %v597_v33 = vpop.permute.xlu0 %596 }
 0x4ed   :  { %600 = vst.msk [vmem:[#allocation8 + $0x4] sm:$0x3] %vm247_vm5, %v597_v33 }
 0x509   :  { %v923_v52 = vpop.xlane.xlu1 %922 }
 0x50a   :  { %v924_v57 = vsub.f32 %v920_v27, %v923_v52 }
 0x50c   :  { %v925_v58 = vmul.f32 1.442695, %v924_v57 }
 0x54e   :  { %v1014_v34 = vpop.f32.mrb[10].mxu1 }
 0x54f   :  { %v1088_v35 = vadd.f32 %v1087_v29, %v1014_v34  ;;  %v1671_v36 = vpop.f32.mrb[11].mxu1 }
 0x551   :  { %v1091_v37 = vadd.f32 %v2087_v17, %v1088_v35 }
 0x552   :  { %v1258_v0 = vpop.f32.mrb[12].mxu1 }
 0x553   :  { %1688 = vmatmul.mubr.msk.f32.vlgmr.msra.gmra.mrb[12].mxu0 %vm81_vm3, %v1091_v37  ;;  %v1092_v5 = vsel %vm236_vm4, %v1091_v37, -inf  ;;  %v1696_v11 = vpop.f32.mrb[13].mxu1 }
 0x554   :  { %1093 = vmax.xlane.f32.xlu1 %v1092_v5  ;;  %1786 = vmatpush3.bf16.msra.mxu0 %v2051_v9 }
 0x555   :  { %1712 = vmatprep.mubr.msk.f32.mxu0 %vm1958_vm0, %v1959_v1 }
 0x557   :  { %1713 = vmatmul.mubr.msk.f32.vlgmr.msra.gmra.mrb[14].mxu0 %vm155_vm2, %v1286_v38 }
 0x5e1   :  { %v1094_v53 = vpop.xlane.xlu1 %1093 }
 0x5e2   :  { %v1095_v6 = vsub.f32 %v1091_v37, %v1094_v53 }
 0x5e4   :  { %v1096_v7 = vmul.f32 1.442695, %v1095_v6 }
 0x626   :  { %v1185_v39 = vpop.f32.mrb[12].mxu0 }
 0x627   :  { %v1259_v40 = vadd.f32 %v1258_v0, %v1185_v39  ;;  %v1689_v41 = vpop.f32.mrb[13].mxu0 }
 0x629   :  { %v1262_v42 = vadd.f32 %v2087_v17, %v1259_v40 }
 0x62a   :  { %v1429_v44 = vpop.f32.mrb[14].mxu0 }
 0x62b   :  { %1706 = vmatmul.mubr.msk.f32.vlgmr.msra.gmra.mrb[14].mxu1 %vm81_vm3, %v1262_v42  ;;  %v1263_v43 = vsel %vm236_vm4, %v1262_v42, -inf  ;;  %v1714_v9 = vpop.f32.mrb[15].mxu0 }
 0x62c   :  { %1264 = vmax.xlane.f32.xlu0 %v1263_v43 }
 0x6b9   :  { %v1265_v63 = vpop.xlane.xlu0 %1264 }
 0x6ba   :  { %v1266_v12 = vsub.f32 %v1262_v42, %v1265_v63 }
 0x6bc   :  { %v1267_v13 = vmul.f32 1.442695, %v1266_v12 }
 0x6fe   :  { %v1356_v45 = vpop.f32.mrb[14].mxu1 }
 0x6ff   :  { %v1430_v46 = vadd.f32 %v1429_v44, %v1356_v45  ;;  %v1707_v1 = vpop.f32.mrb[15].mxu1 }
 0x701   :  { %v1433_v47 = vadd.f32 %v2087_v17, %v1430_v46 }
 0x703   :  { %1457 = vst.msk [vmem:[#allocation9] sm:$0x3] %vm70_vm1, %v1433_v47  ;;  %v1434_v49 = vsel %vm236_vm4, %v1433_v47, -inf }
 0x704   :  { %1435 = vmax.xlane.f32.xlu1 %v1434_v49 }
 0x715   :  { %757 = vrot.lane.b32.xlu1 %v1813_v51, %s1960_s4 }
 0x791   :  { %v1436_v54 = vpop.xlane.xlu1 %1435 }
 0x792   :  { %v1437_v14 = vsub.f32 %v1433_v47, %v1436_v54 }
 0x794   :  { %v1438_v15 = vmul.f32 1.442695, %v1437_v14 }
 0x795   :  { %v758_v55 = vpop.permute.xlu1 %757 }
 0x796   :  { %v760_v56 = vsel %vm247_vm5, %v758_v55, 0.0 }
 0x797   :  { %761 = vadd.xlane.f32.xlu1 %v760_v56 }
 0x824   :  { %v762_v17 = vpop.xlane.xlu1 %761 }
 0x825   :  { %1814 = vlog2.f32 %v762_v17 }
 0x826   :  { %1816 = vpow2.f32 %v925_v58 }
 0x827   :  { %1818 = vpow2.f32 %v1096_v7 }
 0x82f   :  { %v1815_v59 = vpop.eup %1814 }
 0x830   :  { %v764_v60 = vmul.f32 0.6931472, %v1815_v59  ;;  %v1817_v62 = vpop.eup %1816 }
 0x831   :  { %v1819_v8 = vpop.eup %1818 }
 0x832   :  { %v765_v61 = vsub.f32 %v753_v48, %v764_v60 }
 0x834   :  { %767 = vrot.lane.b32.xlu0 %v765_v61, %s1960_s4 }
 0x838   :  { %928 = vrot.lane.b32.xlu0 %v1817_v62, %s1960_s4 }
 0x8a6   :  { %v768_v2 = vpop.permute.xlu0 %767 }
 0x8a7   :  { %771 = vst.msk [vmem:[#allocation8 + $0x6] sm:$0x3] %vm247_vm5, %v768_v2 }
 0x8aa   :  { %v929_v3 = vpop.permute.xlu0 %928 }
 0x8ab   :  { %v931_v4 = vsel %vm247_vm5, %v929_v3, 0.0 }
 0x8ac   :  { %932 = vadd.xlane.f32.xlu0 %v931_v4 }
 0x8c2   :  { %1099 = vrot.lane.b32.xlu0 %v1819_v8, %s1960_s4 }
 0x939   :  { %v933_v10 = vpop.xlane.xlu0 %932 }
 0x93a   :  { %1820 = vlog2.f32 %v933_v10 }
 0x93b   :  { %1822 = vpow2.f32 %v1267_v13 }
 0x93c   :  { %1824 = vpow2.f32 %v1438_v15 }
 0x93d   :  { %v1100_v22 = vpop.permute.xlu0 %1099 }
 0x93e   :  { %v1102_v23 = vsel %vm247_vm5, %v1100_v22, 0.0 }
 0x944   :  { %v1821_v16 = vpop.eup %1820 }
 0x945   :  { %v935_v18 = vmul.f32 0.6931472, %v1821_v16  ;;  %v1823_v20 = vpop.eup %1822 }
 0x946   :  { %v1825_v21 = vpop.eup %1824 }
 0x947   :  { %v936_v19 = vsub.f32 %v924_v57, %v935_v18 }
 0x949   :  { %938 = vrot.lane.b32.xlu1 %v936_v19, %s1960_s4 }
 0x94d   :  { %1270 = vrot.lane.b32.xlu1 %v1823_v20, %s1960_s4 }
 0x951   :  { %1441 = vrot.lane.b32.xlu1 %v1825_v21, %s1960_s4 }
 0x975   :  { %1103 = vadd.xlane.f32.xlu1 %v1102_v23 }
 0x9bb   :  { %v939_v24 = vpop.permute.xlu1 %938 }
 0x9bc   :  { %942 = vst.msk [vmem:[#allocation8 + $0x8] sm:$0x3] %vm247_vm5, %v939_v24 }
 0x9bf   :  { %v1271_v25 = vpop.permute.xlu1 %1270 }
 0x9c0   :  { %v1273_v31 = vsel %vm247_vm5, %v1271_v25, 0.0 }
 0x9c3   :  { %v1442_v26 = vpop.permute.xlu1 %1441 }
 0x9c4   :  { %v1444_v32 = vsel %vm247_vm5, %v1442_v26, 0.0 }
 0xa02   :  { %v1104_v27 = vpop.xlane.xlu1 %1103 }
 0xa03   :  { %1826 = vlog2.f32 %v1104_v27 }
 0xa0d   :  { %v1827_v28 = vpop.eup %1826 }
 0xa0e   :  { %v1106_v29 = vmul.f32 0.6931472, %v1827_v28 }
 0xa10   :  { %v1107_v30 = vsub.f32 %v1095_v6, %v1106_v29 }
 0xa12   :  { %1109 = vrot.lane.b32.xlu0 %v1107_v30, %s1960_s4 }
 0xa31   :  { %1274 = vadd.xlane.f32.xlu0 %v1273_v31 }
 0xa35   :  { %1445 = vadd.xlane.f32.xlu0 %v1444_v32 }
 0xa84   :  { %v1110_v33 = vpop.permute.xlu0 %1109 }
 0xa85   :  { %1113 = vst.msk [vmem:[#allocation8 + $0xa] sm:$0x3] %vm247_vm5, %v1110_v33 }
 0xabe   :  { %v1275_v34 = vpop.xlane.xlu0 %1274 }
 0xabf   :  { %1828 = vlog2.f32 %v1275_v34 }
 0xac2   :  { %v1446_v35 = vpop.xlane.xlu0 %1445 }
 0xac3   :  { %1830 = vlog2.f32 %v1446_v35 }
 0xac4   :  { %1909 = shalt.err (!%p1906_p0)
}
 0xac5   :  { %s1910_s18 = scalar_lea.hbm %s2241_s6, 32 }
 0xac6   :  { %p1911_p1 = scmp.ne.s32.totalorder %s2241_s6, %s1910_s18  ;;  %p1914_p2 = scmp.lt.u32.totalorder %s1910_s18, %s2241_s6 }
 0xac8   :  { %p1916_p3 = pnand %p1914_p2, %p1911_p1 }
 0xaca   :  { %1919 = shalt.err (!%p1916_p3)
}
 0xacb   :  { %1479 = dma.vmem_to_hbm [thread:$0]  %s1477_s14, 32, %s2241_s6, [#allocation10]   ;;  %v1829_v36 = vpop.eup %1828 }
 0xacc   :  { %v1277_v37 = vmul.f32 0.6931472, %v1829_v36  ;;  %s1962_s26 = smov [#allocation8]  }
 0xacd   :  { %v1831_v0 = vpop.eup %1830  ;;  %s1463_s27 = sshll.u32 %s1962_s26, 4  ;;  %s1464_s27 = int_to_ptr.vmem [resolvable:$true] %s1463_s27 }
 0xace   :  { %v1278_v5 = vsub.f32 %v1266_v12, %v1277_v37  ;;  %v1448_v11 = vmul.f32 0.6931472, %v1831_v0  ;;  %s1920_s6 = scalar_lea.vmem %s1464_s27, 256  ;;  %p1925_p5 = scmp.lt.s32.totalorder %s1464_s27, %s1464_s27 }
 0xacf   :  { %p1921_p4 = scmp.ne.s32.totalorder %s1464_s27, %s1920_s6  ;;  %p1926_p6 = scmp.lt.s32.totalorder %s1920_s6, %s1920_s6 }
 0xad0   :  { %1280 = vrot.lane.b32.xlu1 %v1278_v5, %s1960_s4  ;;  %v1449_v38 = vsub.f32 %v1437_v14, %v1448_v11 }
 0xad1   :  { %p1927_p7 = por %p1926_p6, %p1925_p5 }
 0xad2   :  { %1451 = vrot.lane.b32.xlu0 %v1449_v38, %s1960_s4 }
 0xad3   :  { %p1928_p8 = pnand %p1927_p7, %p1921_p4 }
 0xb42   :  { %v1281_v39 = vpop.permute.xlu1 %1280 }
 0xb43   :  { %1284 = vst.msk [vmem:[#allocation8 + $0xc] sm:$0x3] %vm247_vm5, %v1281_v39 }
 0xb44   :  { %v1452_v40 = vpop.permute.xlu0 %1451 }
 0xb45   :  { %1455 = vst.msk [vmem:[#allocation8 + $0xe] sm:$0x3] %vm247_vm5, %v1452_v40 }
 0xb46   :  { %1931 = shalt.err (!%p1928_p8)
}
 0xb47   :  { %s1932_s30 = scalar_lea.hbm %s2240_s5, 256 }
 0xb48   :  { %p1933_p9 = scmp.ne.s32.totalorder %s2240_s5, %s1932_s30  ;;  %p1936_p10 = scmp.lt.u32.totalorder %s1932_s30, %s2240_s5 }
 0xb4a   :  { %p1938_p11 = pnand %p1936_p10, %p1933_p9 }
 0xb4c   :  { %1941 = shalt.err (!%p1938_p11)
}
 0xb4d   :  { %1469 = dma.vmem_to_hbm [thread:$0]  %s1464_s27, 256, %s2240_s5, [#allocation4], %s1954_s2, %s1954_s2, %s1955_s21  }
 0xb4e   :  { %1946 = dma.done.wait [#allocation4], 256  }
 0xb4f   :  { %1947 = vsyncadd [#allocation4], 4294967040 }
 0xb50   :  { %1948 = dma.done.wait [#allocation10], 32  }
 0xb51   :  { %1949 = vsyncadd [#allocation10], 4294967264 }
 0xb52   :  { %1486 = vsyncpa [#allocation3], 1 }
 0xb53   :  { %1487 = vsyncpa [#allocation6], 1 }
 0xb54   :  { %1488 = vsyncpa [#allocation4], 1 }
 0xb55   :  { %1489 = vsyncpa [#allocation10], 1 }

</bundles_post_ra>
